<compile_context>
chip_gen: v7x
topology: tpu7x:2x2x1
jax: 0.10.0
libtpu: 0.0.40
codegen_flags: <defaults>
</compile_context>

<pallas_src>
import functools

import jax
import jax.numpy as jnp
import numpy as np
from jax.experimental import pallas as pl
from jax.experimental.pallas import tpu as pltpu


def make_interp_matrix(out_size: int, in_size: int) -> jnp.ndarray:
    """Row-stochastic (out_size, in_size) matrix reproducing F.interpolate
    bilinear (align_corners=False) along one axis."""
    i = jnp.arange(out_size, dtype=jnp.float32)
    scale = in_size / out_size
    src = (i + 0.5) * scale - 0.5
    src = jnp.maximum(src, 0.0)                      # PyTorch clamps negative src to 0
    i0 = jnp.floor(src).astype(jnp.int32)
    i0 = jnp.minimum(i0, in_size - 1)
    i1 = jnp.minimum(i0 + 1, in_size - 1)
    w1 = src - i0.astype(jnp.float32)
    w0 = 1.0 - w1
    m = jnp.zeros((out_size, in_size), dtype=jnp.float32)
    rows = jnp.arange(out_size)
    m = m.at[rows, i0].add(w0)
    m = m.at[rows, i1].add(w1)
    return m


def _round_up(x: int, m: int) -> int:
    return ((x + m - 1) // m) * m


def _vmem_capacity_bytes() -> int:
    try:
        return int(pltpu.get_tpu_info().vmem_capacity_bytes)
    except Exception:
        return 64 * 1024 * 1024            # conservative (v7x-sized) fallback


def _pick_tile(extent: int, align: int, preferred: int) -> int:
    """Largest multiple of `align` dividing `extent` (itself a multiple of
    `align`) that is <= preferred."""
    t = (min(preferred, extent) // align) * align
    t = max(t, align)
    while t > align and extent % t:
        t -= align
    return t


def _semseg_decode_kernel(pred_ref, wh_ref, wwt_ref, out_ref, y_ref, *,
                          num_classes: int, h_in_pad: int):
    """One (batch, W-tile, H-tile) grid step.

    pred_ref: (C*H_in_pad, W_in)   stacked-channel logits (batch dim squeezed)
    wh_ref  : (TH, H_in_pad)       rows of the height interp matrix for this tile
    wwt_ref : (W_in, TW)           cols of the width interp matrix for this tile
    out_ref : (TH, TW)             class-index tile
    y_ref   : (C*H_in_pad, TW)     persistent VMEM cache of the width matmul
    """
    c = num_classes

    # Width matmul once per (batch, W-tile): the innermost grid axis iterates
    # H tiles ("arbitrary"), so this cached result is reused for every H tile.
    @pl.when(pl.program_id(2) == 0)
    def _():
        y_ref[...] = jnp.dot(
            pred_ref[...], wwt_ref[...],
            preferred_element_type=jnp.float32).astype(y_ref.dtype)

    if c == 1:
        out_ref[...] = jnp.zeros(out_ref.shape, out_ref.dtype)
        return

    wh = wh_ref[...]                                       # (TH, H_in_pad)

    def up(ci: int):
        # Static channel offset -> sublane-aligned static slice
        # (h_in_pad is a multiple of the sublane packing).
        y_c = y_ref[pl.ds(ci * h_in_pad, h_in_pad), :]
        return jnp.dot(wh, y_c, preferred_element_type=jnp.float32)

    # Fully-unrolled channel argmax with pairwise merging: each pair is reduced
    # locally in vregs, then a single compare/select updates the running
    # (best_val, best_idx) -- half the accumulator read-modify-write traffic.
    # Strict '>' everywhere keeps the first (lowest-index) max, matching torch.
    u0, u1 = up(0), up(1)
    take = u1 > u0
    best_val = jnp.where(take, u1, u0)
    best_idx = take.astype(jnp.int32)

    for p in range(1, c // 2):
        ca, cb = 2 * p, 2 * p + 1
        ua, ub = up(ca), up(cb)
        tb = ub > ua
        pair_val = jnp.where(tb, ub, ua)
        pair_idx = jnp.where(tb, jnp.int32(cb), jnp.int32(ca))
        t = pair_val > best_val
        best_val = jnp.where(t, pair_val, best_val)
        best_idx = jnp.where(t, pair_idx, best_idx)

    if c % 2 == 1:
        u_last = up(c - 1)
        best_idx = jnp.where(u_last > best_val, jnp.int32(c - 1), best_idx)

    out_ref[...] = best_idx.astype(out_ref.dtype)


def semseg_decoder_forward(pred, label, output_name: str = "semseg_pred", *,
                           th: int = None, tw: int = None,
                           mxu_dtype=jnp.bfloat16, index_dtype=None):
    """Pallas implementation of SemSegDecoder.forward.

    pred : (N, C, H_in, W_in) float logits, a tuple whose first item is that, or None
    label: (N, H, W) array or {'gt_seg': (N, H, W)} dict -> only the shape is used.
    """
    if pred is None:
        return {}
    if isinstance(pred, tuple):
        pred = pred[0]
    if isinstance(label, dict):
        label = label["gt_seg"]

    n, c, h_in, w_in = pred.shape
    h_out, w_out = int(label.shape[-2]), int(label.shape[-1])

    # Class-index dtype: int8 when it fits (4x less output HBM writeback).
    # TODO(synk): PyTorch returns int64; int8/int32 assumed acceptable downstream.
    if index_dtype is None:
        index_dtype = jnp.int8 if c <= 128 else jnp.int32
    mxu_dtype = np.dtype(mxu_dtype)
    out_dtype = np.dtype(index_dtype)

    # ---- alignment / padding -------------------------------------------------
    mxu_sub = 16 if mxu_dtype.itemsize == 2 else 8       # bf16 packs 2 rows / sublane
    out_sub = {1: 32, 2: 16, 4: 8}[out_dtype.itemsize]   # int8 tiles are (32,128)
    align_h, align_w = max(out_sub, mxu_sub), 128
    h_in_pad = _round_up(h_in, mxu_sub)                  # per-channel row stride

    # ---- hardware-aware tile selection ----------------------------------------
    vmem_cap = _vmem_capacity_bytes()
    big_vmem = vmem_cap >= 96 * 1024 * 1024              # v5e/v6e (128 MiB); v7x has 64
    pref_tw, pref_th = (1024 if big_vmem else 512), 256
    vmem_budget = int(vmem_cap * 0.6)

    if th is None:
        h_pad = _round_up(h_out, align_h)
        th, auto_h = _pick_tile(h_pad, align_h, pref_th), True
    else:
        th = _round_up(th, align_h)
        h_pad, auto_h = _round_up(h_out, th), False
    if tw is None:
        w_pad = _round_up(w_out, align_w)
        tw, auto_w = _pick_tile(w_pad, align_w, pref_tw), True
    else:
        tw = _round_up(tw, align_w)
        w_pad, auto_w = _round_up(w_out, tw), False

    def footprint(th_, tw_):
        # double-buffered inputs/output + persistent cache + argmax temporaries
        return (2 * c * h_in_pad * w_in * mxu_dtype.itemsize      # pred block (2 bufs)
                + 2 * th_ * h_in_pad * mxu_dtype.itemsize         # wh tile
                + 2 * w_in * tw_ * mxu_dtype.itemsize             # wwt tile
                + 2 * th_ * tw_ * out_dtype.itemsize              # out tile
                + c * h_in_pad * tw_ * mxu_dtype.itemsize         # y cache (1 buf)
                + 6 * th_ * tw_ * 4)                              # best/up temporaries

    while footprint(th, tw) > vmem_budget:
        if auto_w and tw > align_w:
            tw = _pick_tile(w_pad, align_w, tw // 2)
        elif auto_h and th > align_h:
            th = _pick_tile(h_pad, align_h, th // 2)
        else:
            break
    vmem_limit = min(max(vmem_budget, footprint(th, tw) + (8 << 20)),
                     int(vmem_cap * 0.9))

    # ---- interpolation matrices (PyTorch half-pixel weights), padded ----------
    wh = make_interp_matrix(h_out, h_in)                   # (H_out, H_in) f32
    wwt = make_interp_matrix(w_out, w_in).T                # (W_in, W_out) f32
    wh_p = jnp.zeros((h_pad, h_in_pad), jnp.float32).at[:h_out, :h_in].set(wh)
    wwt_p = jnp.zeros((w_in, w_pad), jnp.float32).at[:, :w_out].set(wwt)
    wh_p = wh_p.astype(mxu_dtype)
    wwt_p = wwt_p.astype(mxu_dtype)

    # ---- logits: cast once, pad H_in to the sublane stride, merge (C, H_in_pad)
    # into one stacked axis in HBM (free metadata reshape; no in-kernel repack) --
    x = pred.astype(mxu_dtype)
    if h_in_pad != h_in:
        x = jnp.pad(x, ((0, 0), (0, 0), (0, h_in_pad - h_in), (0, 0)))
    x = x.reshape(n, c * h_in_pad, w_in)

    kernel = functools.partial(_semseg_decode_kernel, num_classes=c,
                               h_in_pad=h_in_pad)

    grid = (n, w_pad // tw, h_pad // th)        # H tiles innermost ("arbitrary")

    flops = (2 * n * c * h_in_pad * w_in * w_pad            # width matmul (cached)
             + 2 * n * c * h_pad * h_in_pad * w_pad)        # height matmuls
    bytes_accessed = (x.size * mxu_dtype.itemsize
                      + wh_p.size * mxu_dtype.itemsize
                      + wwt_p.size * mxu_dtype.itemsize
                      + n * h_pad * w_pad * out_dtype.itemsize)

    out = pl.pallas_call(
        kernel,
        out_shape=jax.ShapeDtypeStruct((n, h_pad, w_pad), out_dtype),
        grid=grid,
        in_specs=[
            # Full logits block; re-DMA'd only when the batch index changes.
            # TODO(synk): on v7x, pipeline_mode=pl.Buffered(1) here would drop the
            # never-used second pred buffer; left at the default for toolchain
            # compatibility -- the VMEM budget above already counts 2 copies.
            pl.BlockSpec((None, c * h_in_pad, w_in), lambda b, iw, ih: (b, 0, 0)),
            # Height interp rows for this H tile.
            pl.BlockSpec((th, h_in_pad), lambda b, iw, ih: (ih, 0)),
            # Width interp columns for this W tile (lane-dense).
            pl.BlockSpec((w_in, tw), lambda b, iw, ih: (0, iw)),
        ],
        out_specs=pl.BlockSpec((None, th, tw), lambda b, iw, ih: (b, ih, iw)),
        scratch_shapes=[pltpu.VMEM((c * h_in_pad, tw), mxu_dtype)],
        compiler_params=pltpu.CompilerParams(
            # batch / W-tile axes shared across TensorCores; the H-tile axis must
            # stay on one core ("arbitrary") because it reuses the cached scratch.
            dimension_semantics=("parallel", "parallel", "arbitrary"),
            vmem_limit_bytes=vmem_limit,
        ),
        cost_estimate=pl.CostEstimate(flops=flops, transcendentals=0,
                                      bytes_accessed=bytes_accessed),
    )(x, wh_p, wwt_p)

    if (h_pad, w_pad) != (h_out, w_out):
        out = out[:, :h_out, :w_out]
    return {output_name: out}


def _reference_forward(pred, h_out, w_out):
    """Pure-JAX reference using the same separable bilinear matrices.

    argmax is taken on the upsampled logits; softmax is monotone so
    argmax(softmax(x)) == argmax(x)."""
    wh = make_interp_matrix(h_out, pred.shape[2])
    wwt = make_interp_matrix(w_out, pred.shape[3]).T
    up = jnp.einsum("hk,nckw,wv->nchv", wh, pred.astype(jnp.float32), wwt)
    return jnp.argmax(up, axis=1).astype(jnp.int32)


if __name__ == "__main__":
    key = jax.random.PRNGKey(0)
    k_pred, k_lab = jax.random.split(key)

    N, C, H_IN, W_IN = 2, 4, 8, 16
    H_OUT, W_OUT = 32, 256

    pred = jax.random.normal(k_pred, (N, C, H_IN, W_IN), dtype=jnp.float32)
    gt_seg = jax.random.randint(k_lab, (N, H_OUT, W_OUT), 0, C, dtype=jnp.int32)
    label = {"gt_seg": gt_seg}

    ref = np.asarray(_reference_forward(pred, H_OUT, W_OUT))

    # 1) f32 MXU path, int32 indices, explicit small tiles -> grid (2, 2, 2):
    #    exercises the per-(batch, W-tile) width-matmul cache and its reuse
    #    across H tiles.  Same factorization/dtypes as the reference -> exact.
    out_f32 = semseg_decoder_forward(pred, label, th=16, tw=128,
                                     mxu_dtype=jnp.float32,
                                     index_dtype=jnp.int32)["semseg_pred"]
    jax.block_until_ready(out_f32)
    np.testing.assert_array_equal(np.asarray(out_f32), ref)
    assert out_f32.shape == (N, H_OUT, W_OUT) and out_f32.dtype == jnp.int32

    # 2) Default fast path: bf16 MXU inputs, auto tiles, int8 class map (C<=128).
    #    Also exercises tuple input and the H_in -> sublane-stride padding path.
    #    bf16 rounding can flip near-tied argmax pixels, so allow a small budget.
    out_fast = semseg_decoder_forward((pred,), label)["semseg_pred"]
    jax.block_until_ready(out_fast)
    assert out_fast.shape == (N, H_OUT, W_OUT) and out_fast.dtype == jnp.int8
    mismatch = float(np.mean(np.asarray(out_fast).astype(np.int32) != ref))
    assert mismatch < 0.02, f"bf16 argmax mismatch fraction {mismatch:.4%}"

    # 3) pred=None returns {} like the PyTorch module.
    assert semseg_decoder_forward(None, label) == {}

    print("KERNEL_OK")
</pallas_src>

<mosaic_0001>
module attributes {stable_mosaic.version = 11 : i64} {
  func.func @_semseg_decode_kernel(%arg0: i32, %arg1: i32, %arg2: i32, %arg3: memref<1x32x16xf32, #tpu.memory_space<vmem>>, %arg4: memref<16x8xf32, #tpu.memory_space<vmem>>, %arg5: memref<16x128xf32, #tpu.memory_space<vmem>>, %arg6: memref<1x16x128xi32, #tpu.memory_space<vmem>>, %arg7: memref<32x128xf32, #tpu.memory_space<vmem>>) attributes {dimension_semantics = [#tpu.dimension_semantics<parallel>, #tpu.dimension_semantics<parallel>, #tpu.dimension_semantics<arbitrary>], iteration_bounds = array<i64: 2, 2, 2>, scalar_prefetch = 0 : i64, scratch_operands = 1 : i64, tpu.core_type = #tpu.core_type<tc>, window_params = [{transform_indices = @transform_0, window_bounds = array<i64: 1, 32, 16>}, {transform_indices = @transform_1, window_bounds = array<i64: 16, 8>}, {transform_indices = @transform_2, window_bounds = array<i64: 16, 128>}, {transform_indices = @transform_3, window_bounds = array<i64: 1, 16, 128>}]} {
    %c0_i32 = arith.constant 0 : i32
    %0 = arith.cmpi eq, %arg2, %c0_i32 : i32
    %1 = arith.extui %0 : i1 to i32
    %c0_i32_0 = arith.constant 0 : i32
    %2 = arith.cmpi ne, %1, %c0_i32_0 : i32
    scf.if %2 {
      %c0_13 = arith.constant 0 : index
      %c0_14 = arith.constant 0 : index
      %c0_15 = arith.constant 0 : index
      %25 = vector.load %arg3[%c0_13, %c0_14, %c0_15] : memref<1x32x16xf32, #tpu.memory_space<vmem>>, vector<1x32x16xf32>
      %26 = vector.shape_cast %25 : vector<1x32x16xf32> to vector<32x16xf32>
      %c0_16 = arith.constant 0 : index
      %c0_17 = arith.constant 0 : index
      %27 = vector.load %arg5[%c0_16, %c0_17] : memref<16x128xf32, #tpu.memory_space<vmem>>, vector<16x128xf32>
      %cst_18 = arith.constant dense<0.000000e+00> : vector<32x128xf32>
      %28 = tpu.matmul %26, %27, %cst_18 {dimension_numbers = #tpu.dot_dimension_numbers<[1], [0], [0], [1], [0, 0, 1, 1], [], []>} : vector<32x16xf32>, vector<16x128xf32>, vector<32x128xf32> -> vector<32x128xf32>
      %c0_19 = arith.constant 0 : index
      %c0_20 = arith.constant 0 : index
      %29 = vector.load %arg7[%c0_19, %c0_20] : memref<32x128xf32, #tpu.memory_space<vmem>>, vector<32x128xf32>
      tpu.vector_store %arg7[%c0_19, %c0_20], %28 {strides = array<i32>} : memref<32x128xf32, #tpu.memory_space<vmem>>, vector<32x128xf32>,
    } else {
    }
    %c0 = arith.constant 0 : index
    %c0_1 = arith.constant 0 : index
    %3 = vector.load %arg4[%c0, %c0_1] : memref<16x8xf32, #tpu.memory_space<vmem>>, vector<16x8xf32>
    %c0_2 = arith.constant 0 : index
    %c0_3 = arith.constant 0 : index
    %4 = vector.load %arg7[%c0_2, %c0_3] : memref<32x128xf32, #tpu.memory_space<vmem>>, vector<8x128xf32>
    %cst = arith.constant dense<0.000000e+00> : vector<16x128xf32>
    %5 = tpu.matmul %3, %4, %cst {dimension_numbers = #tpu.dot_dimension_numbers<[1], [0], [0], [1], [0, 0, 1, 1], [], []>} : vector<16x8xf32>, vector<8x128xf32>, vector<16x128xf32> -> vector<16x128xf32>
    %c8 = arith.constant 8 : index
    %c0_4 = arith.constant 0 : index
    %6 = vector.load %arg7[%c8, %c0_4] : memref<32x128xf32, #tpu.memory_space<vmem>>, vector<8x128xf32>
    %cst_5 = arith.constant dense<0.000000e+00> : vector<16x128xf32>
    %7 = tpu.matmul %3, %6, %cst_5 {dimension_numbers = #tpu.dot_dimension_numbers<[1], [0], [0], [1], [0, 0, 1, 1], [], []>} : vector<16x8xf32>, vector<8x128xf32>, vector<16x128xf32> -> vector<16x128xf32>
    %8 = arith.cmpf ogt, %7, %5 : vector<16x128xf32>
    %9 = arith.select %8, %7, %5 : vector<16x128xi1>, vector<16x128xf32>
    %10 = arith.extui %8 : vector<16x128xi1> to vector<16x128xi32>
    %c16 = arith.constant 16 : index
    %c0_6 = arith.constant 0 : index
    %11 = vector.load %arg7[%c16, %c0_6] : memref<32x128xf32, #tpu.memory_space<vmem>>, vector<8x128xf32>
    %cst_7 = arith.constant dense<0.000000e+00> : vector<16x128xf32>
    %12 = tpu.matmul %3, %11, %cst_7 {dimension_numbers = #tpu.dot_dimension_numbers<[1], [0], [0], [1], [0, 0, 1, 1], [], []>} : vector<16x8xf32>, vector<8x128xf32>, vector<16x128xf32> -> vector<16x128xf32>
    %c24 = arith.constant 24 : index
    %c0_8 = arith.constant 0 : index
    %13 = vector.load %arg7[%c24, %c0_8] : memref<32x128xf32, #tpu.memory_space<vmem>>, vector<8x128xf32>
    %cst_9 = arith.constant dense<0.000000e+00> : vector<16x128xf32>
    %14 = tpu.matmul %3, %13, %cst_9 {dimension_numbers = #tpu.dot_dimension_numbers<[1], [0], [0], [1], [0, 0, 1, 1], [], []>} : vector<16x8xf32>, vector<8x128xf32>, vector<16x128xf32> -> vector<16x128xf32>
    %15 = arith.cmpf ogt, %14, %12 : vector<16x128xf32>
    %16 = arith.select %15, %14, %12 : vector<16x128xi1>, vector<16x128xf32>
    %c3_i32 = arith.constant 3 : i32
    %c2_i32 = arith.constant 2 : i32
    %17 = vector.broadcast %c3_i32 : i32 to vector<16x128xi32>
    %18 = vector.broadcast %c2_i32 : i32 to vector<16x128xi32>
    %19 = arith.select %15, %17, %18 : vector<16x128xi1>, vector<16x128xi32>
    %20 = arith.cmpf ogt, %16, %9 : vector<16x128xf32>
    %21 = arith.select %20, %19, %10 : vector<16x128xi1>, vector<16x128xi32>
    %c0_10 = arith.constant 0 : index
    %c0_11 = arith.constant 0 : index
    %c0_12 = arith.constant 0 : index
    %22 = vector.load %arg6[%c0_10, %c0_11, %c0_12] : memref<1x16x128xi32, #tpu.memory_space<vmem>>, vector<1x16x128xi32>
    %23 = vector.shape_cast %22 : vector<1x16x128xi32> to vector<16x128xi32>
    %24 = vector.shape_cast %21 : vector<16x128xi32> to vector<1x16x128xi32>
    tpu.vector_store %arg6[%c0_10, %c0_11, %c0_12], %24 {strides = array<i32>} : memref<1x16x128xi32, #tpu.memory_space<vmem>>, vector<1x16x128xi32>,
    return
  }
  func.func @transform_0(%arg0: i32, %arg1: i32, %arg2: i32) -> (i32, i32, i32) {
    %c0_i32 = arith.constant 0 : i32
    %c0_i32_0 = arith.constant 0 : i32
    %c0_i32_1 = arith.constant 0 : i32
    return %arg0, %c0_i32, %c0_i32_0 : i32, i32, i32
  }
  func.func @transform_1(%arg0: i32, %arg1: i32, %arg2: i32) -> (i32, i32) {
    %c0_i32 = arith.constant 0 : i32
    %c0_i32_0 = arith.constant 0 : i32
    return %arg2, %c0_i32 : i32, i32
  }
  func.func @transform_2(%arg0: i32, %arg1: i32, %arg2: i32) -> (i32, i32) {
    %c0_i32 = arith.constant 0 : i32
    %c0_i32_0 = arith.constant 0 : i32
    return %c0_i32, %arg1 : i32, i32
  }
  func.func @transform_3(%arg0: i32, %arg1: i32, %arg2: i32) -> (i32, i32, i32) {
    %c0_i32 = arith.constant 0 : i32
    return %arg0, %arg2, %arg1 : i32, i32, i32
  }
}

</mosaic_0001>

<bundles_post_ra>
// kernel: tpu_custom_call.1
= control target key start
LH: loop header
LB: loop body
LE: loop exit
PB: predicated region body
PF: predicated region fallthrough
CT: control target
= control target key end

     0   :  { %s1425_s0 = inlined_call_operand.vmem [shape: f32[2,32,16], index: 0, kind: input, shape index: {}]   ;;  %s1426_s1 = inlined_call_operand.vmem [shape: f32[32,8], index: 1, kind: input, shape index: {}]   ;;  %s1427_s2 = inlined_call_operand.vmem [shape: f32[16,256], index: 2, kind: input, shape index: {}]   ;;  %s1428_s3 = inlined_call_operand.hbm [shape: s32[2,32,256], index: 3, kind: output, shape index: {}]  }
   0x1   :  { %1434 = sst [smem:[#allocation12_spill]] %s1427_s2 }
   0x2   :  { %8 = vsyncpa [#allocation5], 0 }
   0x3   :  { %10 = vsyncpa [#allocation5 + $0x1], 0  ;;  %s1198_s12 = smov 0   ;;  %s1200_s13 = smov 0  }
   0x4   :  { %s1202_s14 = smov 0   ;;  %s1204_s15 = smov 0  }
   0x5   :  { %s1206_s16 = smov 0   ;;  %s1208_s17 = smov 0  }
   0x6   :  { %s1210_s18 = smov 0   ;;  %s1212_s19 = smov 0  }
   0x7   :  { %s1214_s20 = smov 0   ;;  %s1216_s21 = smov 0  }
   0x8   :  { %s1218_s22 = smov 0   ;;  %s1220_s23 = smov 0  }
   0x9 LB: > { %1435 = sst [smem:[#allocation7_spill]] %s1162_s21  ;;  %s847_s24 = sadd.s32 4294967295, %s1170_s23   ;;  %s1170_s23 = sphi %s1220_s23, %s16_s23   ;;  %s1166_s22 = sphi %s1218_s22, %s1448_s22   ;;  %s1162_s21 = sphi %s1216_s21, %s1447_s21   ;;  %s1158_s20 = sphi %s1214_s20, %s1455_s20   ;;  %s1154_s19 = sphi %s1212_s19, %s1445_s19   ;;  %s1150_s18 = sphi %s1210_s18, %s1444_s18   ;;  %s1146_s17 = sphi %s1208_s17, %s1454_s17   ;;  %s1142_s16 = sphi %s1206_s16, %s1453_s16   ;;  %s1138_s15 = sphi %s1204_s15, %s1452_s15   ;;  %s1134_s14 = sphi %s1202_s14, %s1451_s14   ;;  %s1130_s13 = sphi %s1200_s13, %s1450_s13   ;;  %s1126_s12 = sphi %s1198_s12, %s1449_s12  }
   0xa   : > { %1436 = sst [smem:[#allocation8_spill]] %s1166_s22  ;;  %s848_s25 = sadd.s32 4294967294, %s1170_s23  }
   0xb   : > { %s28_s26 = sadd.s32 1, %s1158_s20  ;;  %s31_s27 = sadd.s32 1, %s1162_s21 }
   0xc   : > { %p29_p0 = scmp.ge.s32.totalorder %s28_s26, 2  ;;  %s35_s28 = sadd.s32 1, %s1166_s22 }
   0xd   : > { %p101_p1 = scmp.ne.s32.totalorder %s1142_s16, %s1138_s15  ;;  %s94_s29 = sadd.s32 1, %s1142_s16 }
   0xe   : > { %s1457_s26 = smov (%p29_p0, %s28_s26), 0  ;;  %s1459_s27 = smov (!%p29_p0, %s31_s27), %s1162_s21 }
   0xf   : > { %1437 = sst [smem:[#allocation9_spill]] %s1457_s26  ;;  %p102_p2 = scmp.eq.s32.totalorder %s1170_s23, 0 }
  0x10   : > { %p33_p3 = scmp.ge.s32.totalorder %s1459_s27, 2  ;;  %s118_s30 = ssub.s32 %s1158_s20, %s1457_s26 }
  0x11   : > { %p1272_p4 = por %p102_p2, %p101_p1  ;;  %p134_p5 = scmp.ne.s32.totalorder %s1134_s14, %s1130_s13 }
  0x12   : > { %s1461_s27 = smov (%p33_p3, %s1459_s27), 0  ;;  %s1463_s28 = smov (!%p33_p3, %s35_s28), %s1166_s22 }
  0x13   : > { %1439 = sst [smem:[#allocation10_spill]] %s1461_s27  ;;  %s91_s5 = ssub.s32 %s1162_s21, %s1461_s27 }
  0x14   : > { %p135_p6 = scmp.eq.s32.totalorder %s847_s24, 7  ;;  %p37_p7 = scmp.ge.s32.totalorder %s1463_s28, 2 }
  0x15   : > { %p92_p8 = scmp.eq.s32.totalorder %s91_s5, 0  ;;  %p140_p10 = scmp.ne.s32.totalorder %s1130_s13, %s1126_s12 }
  0x16   : > { %p1283_p9 = por %p135_p6, %p134_p5  ;;  %s1465_s28 = smov (%p37_p7, %s1463_s28), 0 }
  0x17   : > { %1441 = sst [smem:[#allocation11_spill]] %s1465_s28  ;;  %s117_s8 = ssub.s32 %s1166_s22, %s1465_s28 }
  0x18   : > { %s1292_s7 = scalar_select %p92_p8, %s1142_s16, %s94_s29  }
  0x19   : > { %p141_p11 = scmp.eq.s32.totalorder %s848_s25, 7  ;;  %s119_s9 = sor.u32 %s118_s30, %s117_s8 }
  0x1a   : > { %s124_s10 = sadd.s32 1, %s1134_s14  ;;  %s121_s11 = sor.u32 %s119_s9, %s91_s5 }
  0x1b   : > { %p1297_p12 = por %p141_p11, %p140_p10  ;;  %p122_p13 = scmp.eq.s32.totalorder %s121_s11, 0 }
  0x1c   : > { %p850_p0 = scmp.ge.s32.totalorder %s1170_s23, 8 }
  0x1d   : > { %s1302_s24 = scalar_select %p122_p13, %s1134_s14, %s124_s10  }
  0x1e   : > { %157 = sbr.rel (%p850_p0) target bundleno = 48 (0x30), region = 16 }
  0x25   : > { %177 = sbr.rel (!%p1272_p4) target bundleno = 48 (0x30), region = 28  ;;  %s179_s29 = sand.u32 (%p1272_p4), 1, %s1142_s16  }
  0x26   : > { %s852_s25 = sshll.u32 (%p1272_p4), %s1162_s21, 3  ;;  %s851_s30 = sshll.u32 (%p1272_p4), %s179_s29, 4 }
  0x27   : > { %s1443_s2 = sld [smem:[#allocation12_spill]] (%p1272_p4)  ;;  %s181_s11 = scalar_lea.vmem (%p1272_p4), [#allocation3], %s851_s30 }
  0x2d   : > { %s183_s9 = scalar_lea.vmem %s1443_s2, %s852_s25 }
  0x2e   : > { %v213_v0 = vld [vmem:[%s183_s9] sm:$0xff]  ;;  %v215_v1 = vld [vmem:[%s183_s9 + $0x10] sm:$0xff] }
  0x2f   : > { %214 = vst [vmem:[%s181_s11] sm:$0xff] %v213_v0  ;;  %216 = vst [vmem:[%s181_s11 + $0x8] sm:$0xff] %v215_v1 }
  0x30 PF: > { %p853_p1 = scmp.ge.s32.totalorder %s1170_s23, 1  ;;  %p221_p2 = scmp.lt.s32.totalorder %s1170_s23, 9 }
  0x32   : > { %p222_p3 = pnand %p853_p1, %p221_p2 }
  0x33   : > { %s228_s4 = sand.u32 (!%p222_p3), 1, %s1138_s15   ;;  %s258_s10 = sand.u32 (!%p222_p3), 1, %s1130_s13  }
  0x34   : > { %225 = sbr.rel (%p222_p3) target bundleno = 529 (0x211), region = 66  ;;  %s854_s29 = sshll.u32 (!%p222_p3), %s228_s4, 4 }
  0x35   : > { %s855_s25 = sshll.u32 (!%p222_p3), %s258_s10, 4  ;;  %p261_p4 = scmp.lt.s32.totalorder (!%p222_p3), %s1154_s19, 1 }
  0x36   : > { %s858_s30 = sshll.u32 (!%p222_p3), %s1146_s17, 1  ;;  %s230_s15 = scalar_lea.vmem (!%p222_p3), [#allocation3], %s854_s29 }
  0x37   : > { %p267_p5 = scmp.lt.s32.totalorder (!%p222_p3), %s858_s30, 3  ;;  %s1329_s4 = scalar_lea.vmem (!%p222_p3), [#allocation4], %s855_s25 }
  0x38   : > { %p860_p6 = scmp.ne.s32.totalorder (!%p222_p3), %s1146_s17, 0 }
  0x3b   : > { %s262_s8 = scalar_select %p261_p4, %s1154_s19, 1 }
  0x3c   : > { %s1467_s30 = smov (!%p267_p5, %s858_s30), 3  ;;  %276 = sbr.rel (%p860_p6) target bundleno = 283 (0x11b), region = 74 }
  0x3d   : > { %s880_s5 = sshll.u32 %s262_s8, 5  ;;  %s859_s28 = sshll.u32 %s1467_s30, 3  ;;  %v281_v2 = vld [vmem:[%s230_s15] sm:$0xff] (!%p860_p6)  ;;  %v282_v3 = vld [vmem:[%s230_s15 + $0x8] sm:$0xff] (!%p860_p6)  ;;  %vm283_vm0 = vcmask (!%p860_p6), 130048  }
  0x3e   : > { %s265_s2 = scalar_lea.vmem %s1425_s0, %s880_s5  ;;  %s1327_s21 = scalar_lea.vmem %s1426_s1, %s859_s28  ;;  %v930_v5 = vpack.c.bf16 (!%p860_p6), %v282_v3, %v281_v2 }
  0x3f   : > { %v277_v4 = vld [vmem:[%s265_s2] sm:$0xff] (!%p860_p6)  ;;  %v279_v6 = vld [vmem:[%s265_s2 + $0x10] sm:$0xff] (!%p860_p6)  ;;  %v278_v7 = vld [vmem:[%s265_s2 + $0x8] sm:$0xff] (!%p860_p6) }
  0x40   : > { %904 = vmatprep.mubr.msk.f32.mxu0 (!%p860_p6), %vm283_vm0, %v277_v4  ;;  %907 = vmatprep.mubr.msk.f32.mxu1 (!%p860_p6), %vm283_vm0, %v279_v6  ;;  %v280_v8 = vld [vmem:[%s265_s2 + $0x18] sm:$0xff] (!%p860_p6) }
  0x41   : > { %931 = vmatprep.subr.bf16.mxu0 (!%p860_p6), %v930_v5  ;;  %934 = vmatprep.subr.bf16.mxu1 (!%p860_p6), %v930_v5 }
  0x42   : > { %933 = vmatpush3.bf16.msra.mxu0 (!%p860_p6), %v930_v5  ;;  %935 = vmatpush3.bf16.msra.mxu1 (!%p860_p6), %v930_v5 }
  0x45   : > { %905 = vmatmul.mubr.msk.f32.vlgmr.msra.gmra.mrb[0].mxu0 %vm283_vm0, %v278_v7  ;;  %908 = vmatmul.mubr.msk.f32.vlgmr.msra.gmra.mrb[0].mxu1 %vm283_vm0, %v280_v8 }
 0x118   : > { %v906_v9 = vpop.f32.mrb[0].mxu0  ;;  %v909_v10 = vpop.f32.mrb[0].mxu1 }
 0x119   : > { %382 = vst [vmem:[#allocation2 + $0x8] sm:$0xff] %v906_v9  ;;  %384 = vst [vmem:[#allocation2 + $0x18] sm:$0xff] %v909_v10  ;;  %v362_v11 = vpop.f32.mrb[1].mxu0  ;;  %v372_v12 = vpop.f32.mrb[1].mxu1 }
 0x11a   : > { %381 = vst [vmem:[#allocation2] sm:$0xff] %v362_v11  ;;  %383 = vst [vmem:[#allocation2 + $0x10] sm:$0xff] %v372_v12 }
 0x11b PF: > { %v385_v15 = vld [vmem:[%s1327_s21] sm:$0xff]  ;;  %vm388_vm1 = vcmask 64512   ;;  %v386_v16 = vld [vmem:[%s1327_s21 + $0x8] sm:$0xff]  ;;  %s881_s2 = sshll.u32 %s1146_s17, 2  ;;  %s876_s22 = sshll.u32 %s1154_s19, 3  ;;  %v1172_v30 = vmov 2  }
 0x11c   : > { %912 = vmatprep.mubr.msk.f32.mxu0 %vm388_vm1, %v385_v15  ;;  %917 = vmatprep.mubr.msk.f32.mxu1 %vm388_vm1, %v385_v15  ;;  %s729_s21 = sadd.s32 %s1150_s18, %s881_s2  ;;  %s734_s29 = sshll.u32 %s1329_s4, 4  ;;  %v1173_v32 = vmov 0   ;;  %s1354_s29 = int_to_ptr.vmem [resolvable:$true] %s734_s29 }
 0x11d   : > { %s731_s26 = sadd.s32 %s876_s22, %s729_s21  ;;  %s1361_s25 = scalar_lea.sflag [#allocation5], %s258_s10 }
 0x11e   : > { %s877_s28 = sshll.u32 %s731_s26, 7  ;;  %s1044_s30 = scalar_lea.vmem %s1354_s29, 256 }
 0x11f   : > { %s1351_s19 = scalar_lea.hbm %s1428_s3, %s877_s28  ;;  %p1045_p7 = scmp.ne.s32.totalorder %s1354_s29, %s1044_s30 }
 0x120   : > { %v470_v14 = vld [vmem:[#allocation2 + $0x8] sm:$0xff]  ;;  %v628_v18 = vld [vmem:[#allocation2 + $0x18] sm:$0xff]  ;;  %s1174_s8 = smov [#allocation4]  }
 0x121   : > { %v387_v13 = vld [vmem:[#allocation2] sm:$0xff]  ;;  %915 = vmatprep.subr.mxu1 %v470_v14  ;;  %v552_v17 = vld [vmem:[#allocation2 + $0x10] sm:$0xff]  ;;  %p1046_p8 = pnand %p1045_p7, %p1283_p9  ;;  %s1048_s5 = sshll.u32 %s1174_s8, 4  ;;  %s1049_s5 = int_to_ptr.vmem [resolvable:$false] %s1048_s5 }
 0x122   : > { %910 = vmatprep.subr.mxu0 %v387_v13  ;;  %916 = vmatpush3.msra.mxu1 %v470_v14  ;;  %s1050_s9 = scalar_lea.vmem %s1049_s5, 512  ;;  %p1051_p11 = scmp.lt.s32.totalorder %s1354_s29, %s1049_s5 }
 0x123   : > { %911 = vmatpush3.msra.mxu0 %v387_v13  ;;  %918 = vmatmul.mubr.msk.f32.vlgmr.msra.gmra.mrb[0].mxu1 %vm388_vm1, %v386_v16  ;;  %p1047_p10 = pneg %p1046_p8  ;;  %p1052_p13 = scmp.lt.s32.totalorder %s1050_s9, %s1044_s30 }
 0x124   : > { %913 = vmatmul.mubr.msk.f32.vlgmr.msra.gmra.mrb[0].mxu0 %vm388_vm1, %v386_v16  ;;  %920 = vmatprep.subr.mxu0 %v552_v17 }
 0x125   : > { %925 = vmatprep.subr.mxu1 %v628_v18  ;;  %921 = vmatpush3.msra.mxu0 %v552_v17  ;;  %p1053_p0 = por %p1052_p13, %p1051_p11 }
 0x126   : > { %926 = vmatpush3.msra.mxu1 %v628_v18  ;;  %922 = vmatprep.mubr.msk.f32.mxu0 %vm388_vm1, %v385_v15 }
 0x127   : > { %927 = vmatprep.mubr.msk.f32.mxu1 %vm388_vm1, %v385_v15  ;;  %p1054_p1 = pnand %p1053_p0, %p1047_p10 }
 0x128   : > { %923 = vmatmul.mubr.msk.f32.vlgmr.msra.gmra.mrb[2].mxu0 %vm388_vm1, %v386_v16  ;;  %928 = vmatmul.mubr.msk.f32.vlgmr.msra.gmra.mrb[2].mxu1 %vm388_vm1, %v386_v16 }
 0x1f6   : > { %v919_v20 = vpop.f32.mrb[0].mxu1 }
 0x1f7   : > { %v914_v19 = vpop.f32.mrb[0].mxu0  ;;  %v537_v22 = vpop.f32.mrb[1].mxu1 }
 0x1f8   : > { %vm547_vm2 = vcmp.gt.f32.partialorder %v919_v20, %v914_v19  ;;  %v461_v21 = vpop.f32.mrb[1].mxu0 }
 0x1f9   : > { %v549_v23 = vsel %vm547_vm2, %v919_v20, %v914_v19  ;;  %vm546_vm3 = vcmp.gt.f32.partialorder %v537_v22, %v461_v21  ;;  %v551_v33 = vsel %vm547_vm2, 1, %v1173_v32 }
 0x1fa   : > { %v548_v24 = vsel %vm546_vm3, %v537_v22, %v461_v21  ;;  %v550_v36 = vsel %vm546_vm3, 1, %v1173_v32 }
 0x1fb   : > { %v924_v25 = vpop.f32.mrb[2].mxu0  ;;  %v929_v26 = vpop.f32.mrb[2].mxu1 }
 0x1fc   : > { %vm705_vm4 = vcmp.gt.f32.partialorder %v929_v26, %v924_v25  ;;  %v619_v27 = vpop.f32.mrb[3].mxu0  ;;  %v695_v28 = vpop.f32.mrb[3].mxu1 }
 0x1fd   : > { %v707_v29 = vsel %vm705_vm4, %v929_v26, %v924_v25  ;;  %vm704_vm5 = vcmp.gt.f32.partialorder %v695_v28, %v619_v27  ;;  %v709_v31 = vsel %vm705_vm4, 3, %v1172_v30 }
 0x1fe   : > { %vm711_vm6 = vcmp.gt.f32.partialorder %v707_v29, %v549_v23  ;;  %v706_v34 = vsel %vm704_vm5, %v695_v28, %v619_v27  ;;  %v708_v35 = vsel %vm704_vm5, 3, %v1172_v30 }
 0x1ff   : > { %vm710_vm7 = vcmp.gt.f32.partialorder %v706_v34, %v548_v24  ;;  %v713_v37 = vsel %vm711_vm6, %v709_v31, %v551_v33 }
 0x200   : > { %v712_v38 = vsel %vm710_vm7, %v708_v35, %v550_v36  ;;  %715 = vst [vmem:[%s1329_s4 + $0x8] sm:$0xff] %v713_v37 }
 0x201   : > { %714 = vst [vmem:[%s1329_s4] sm:$0xff] %v712_v38 }
 0x202   : > { %1057 = shalt.err (!%p1054_p1)
}
 0x203   : > { %s1058_s10 = scalar_lea.hbm %s1351_s19, 256  ;;  %s1062_s4 = scalar_lea.hbm %s1428_s3, 2048 }
 0x204   : > { %p1059_p2 = scmp.ne.s32.totalorder %s1351_s19, %s1058_s10  ;;  %p1063_p5 = scmp.lt.u32.totalorder %s1351_s19, %s1428_s3 }
 0x205   : > { %p1064_p6 = scmp.lt.u32.totalorder %s1062_s4, %s1058_s10  ;;  %p1066_p8 = scmp.lt.u32.totalorder %s1058_s10, %s1351_s19 }
 0x206   : > { %p1060_p3 = pnand %p1059_p2, %p1283_p9 }
 0x207   : > { %p1065_p7 = por %p1064_p6, %p1063_p5 }
 0x208   : > { %p1061_p4 = pneg %p1060_p3 }
 0x209   : > { %p1067_p10 = por %p1066_p8, %p1065_p7 }
 0x20b   : > { %p1068_p11 = pnand %p1067_p10, %p1061_p4 }
 0x20d   : > { %1071 = shalt.err (!%p1068_p11)
}
 0x20e   : > { %s1175_s22 = smov 128   ;;  %s1176_s26 = smov 256  }
 0x20f   : > { %s1177_s28 = smov 8  }
 0x210   : > { %936 = dma.vmem_to_hbm [thread:$0]  (%p1283_p9), %s1354_s29, 256, %s1351_s19, %s1361_s25, %s1175_s22, %s1176_s26, %s1177_s28  }
 0x211 PF: > { %p942_p13 = scmp.ge.s32.totalorder %s1170_s23, 2  ;;  %s749_s17 = sand.u32 1, %s1126_s12  }
 0x212   : > { %s750_s18 = scalar_lea.sflag [#allocation5], %s749_s17 }
 0x213   : > { %p939_p0 = pnand %p942_p13, %p1297_p12 }
 0x215   : > { %1121 = dma.done.wait (!%p939_p0), %s750_s18, 256  }
 0x216   : > { %1123 = vsyncadd (!%p939_p0), %s750_s18, 4294967040  ;;  %s16_s23 = sadd.s32 1, %s1170_s23   ;;  %s1444_s18 = sld [smem:[#allocation7_spill]] }
 0x217   : > { %p13_p1 = scmp.ge.s32.totalorder %s16_s23, 10   ;;  %s1445_s19 = sld [smem:[#allocation8_spill]] }
 0x218   : > { %s1446_s6 = sld [smem:[#allocation9_spill]]  ;;  %s1447_s21 = sld [smem:[#allocation10_spill]] }
 0x219   : > { %s1448_s22 = sld [smem:[#allocation11_spill]]  ;;  %s1449_s12 = smov %s1130_s13 }
 0x21a   : > { %s1450_s13 = smov %s1134_s14  ;;  %s1451_s14 = smov %s1302_s24 }
 0x21b   : > { %s1452_s15 = smov %s1142_s16  ;;  %s1453_s16 = smov %s1292_s7 }
 0x21c   : > { %s1454_s17 = smov %s1158_s20  ;;  %15 = sbr.rel (!%p13_p1) target bundleno = 9 (0x9), region = 120 }
 0x21e   : > { %s1455_s20 = smov %s1446_s6 }
 0x223   :  { %755 = vsyncpa [#allocation5], 1 }
 0x224   :  { %757 = vsyncpa [#allocation5 + $0x1], 1 }

</bundles_post_ra>
